<compile_context>
chip_gen: v5e
topology: v5e:2x2
jax: 0.10.0
libtpu: 0.0.40
codegen_flags: <defaults>
</compile_context>

<pallas_src>
import functools

import jax
import jax.numpy as jnp
from jax import lax
from jax.experimental import pallas as pl
from jax.experimental.pallas import tpu as pltpu


def _gradloss_kernel(pred_ref, gt_ref, out_ref, acc_ref, *, low_precision_sub):
    n = pl.program_id(1)

    @pl.when(n == 0)
    def _():
        acc_ref[...] = jnp.zeros_like(acc_ref)

    bn = pred_ref.shape[0]
    w = pred_ref.shape[3]

    def per_image(i, carry):
        # Temporaries are bounded to a single image regardless of the batch block size.
        if low_precision_sub:
            d = (pred_ref[i, 0, :, :] - gt_ref[i, 0, :, :]).astype(jnp.float32)
        else:
            d = (pred_ref[i, 0, :, :].astype(jnp.float32)
                 - gt_ref[i, 0, :, :].astype(jnp.float32))

        # Separable Sobel (cross-correlation, 'valid' -> (H-2, W-2)).
        v = d[0:-2, :] + 2.0 * d[1:-1, :] + d[2:, :]        # (H-2, W)   vertical [1,2,1]
        gx = v[:, 0:-2] - v[:, 2:]                           # (H-2, W-2) horizontal [1,0,-1]
        h = d[:, 0:-2] + 2.0 * d[:, 1:-1] + d[:, 2:]         # (H,   W-2) horizontal [1,2,1]
        gy = h[0:-2, :] - h[2:, :]                            # (H-2, W-2) vertical [1,0,-1]

        a = jnp.abs(gx) + jnp.abs(gy)
        # Sublane (XLU) reduce over rows; the lane axis survives in the vreg-resident carry.
        return carry + jnp.sum(a, axis=0, keepdims=True)      # (1, W-2)

    partial = lax.fori_loop(0, bn, per_image, jnp.zeros((1, w - 2), jnp.float32))

    # One small VMEM accumulator update per grid step (vs the old full (H-2, W-2) store).
    acc_ref[...] += partial

    # Single cross-lane reduction + lane-dense (8, 128) output store, once per core sweep.
    @pl.when(n == pl.num_programs(1) - 1)
    def _():
        total = jnp.sum(acc_ref[...], keepdims=True)           # (1, 1)
        out_ref[...] = jnp.broadcast_to(total, out_ref.shape).astype(out_ref.dtype)


def grad_loss(pred, gt):
    """Pallas implementation of GradLoss.forward(pred, gt). pred/gt: (N, 1, H, W)."""
    if pred.shape != gt.shape:
        raise ValueError(f"pred/gt shape mismatch: {pred.shape} vs {gt.shape}")
    if pred.dtype != gt.dtype:
        raise ValueError(f"pred/gt dtype mismatch: {pred.dtype} vs {gt.dtype}")
    N, C, H, W = pred.shape
    assert C == 1, "F.conv2d with a (1,1,3,3) kernel requires single-channel input"
    assert H >= 3 and W >= 3

    itemsize = jnp.dtype(pred.dtype).itemsize
    per_image_in = H * W * itemsize

    # --- Chip detection: core split + bf16 VALU availability -------------------------------
    kind = ""
    try:
        kind = jax.devices()[0].device_kind.lower()
    except Exception:
        pass
    is_v7 = "v7" in kind
    n_cores = 2 if is_v7 else 1          # v5e/v6e are single-TC: no padded zero-image blocks
    low_precision_sub = (pred.dtype == jnp.float32) or (
        pred.dtype == jnp.bfloat16 and ("v6" in kind or is_v7))

    # --- VMEM budgeting: count the f32 working set, not just the HBM-dtype blocks ----------
    vmem_cap = 48 << 20                  # safe on v7x (64 MiB/TC); conservative on v5e/v6e
    margin = 4 << 20
    f32_tmp = 6 * H * W * 4              # per-image temporaries, bounded by the inner loop
    acc_phys = 8 * (-(-max(W - 2, 1) // 128) * 128) * 4
    input_budget = vmem_cap - margin - f32_tmp - acc_phys
    if input_budget < 4 * per_image_in:
        # TODO(synk): H-halo strip tiling for frames too large for a single-image block.
        raise NotImplementedError(
            "grad_loss: a single (1,1,H,W) block (plus its f32 working set) exceeds the VMEM "
            "budget; H-halo strip tiling is not implemented yet.")

    per_buffer = min(2 << 20, input_budget // 4)   # ~1-2 MiB input blocks pipeline well
    bn = int(max(1, min(N, per_buffer // per_image_in)))

    blocks = -(-N // bn)
    nb = -(-blocks // n_cores)           # batch blocks per core
    n_pad = n_cores * nb * bn
    if n_pad != N:
        pad = ((0, n_pad - N), (0, 0), (0, 0), (0, 0))
        pred = jnp.pad(pred, pad)        # zero images contribute exactly 0 to the sum
        gt = jnp.pad(gt, pad)

    vmem_limit = int(min(vmem_cap, 4 * bn * per_image_in + f32_tmp + acc_phys + margin))
    vmem_limit = max(vmem_limit, 16 << 20)

    core_sem = pltpu.CORE_PARALLEL if n_cores > 1 else pltpu.ARBITRARY
    kernel = functools.partial(_gradloss_kernel, low_precision_sub=low_precision_sub)

    partials = pl.pallas_call(
        kernel,
        out_shape=jax.ShapeDtypeStruct((n_cores, 8, 128), jnp.float32),
        grid_spec=pltpu.PrefetchScalarGridSpec(
            num_scalar_prefetch=0,
            grid=(n_cores, nb),
            in_specs=[
                pl.BlockSpec((bn, 1, H, W), lambda c, n: (c * nb + n, 0, 0, 0)),
                pl.BlockSpec((bn, 1, H, W), lambda c, n: (c * nb + n, 0, 0, 0)),
            ],
            out_specs=pl.BlockSpec((1, 8, 128), lambda c, n: (c, 0, 0)),
            scratch_shapes=[pltpu.VMEM((1, W - 2), jnp.float32)],
        ),
        compiler_params=pltpu.CompilerParams(
            dimension_semantics=(core_sem, pltpu.ARBITRARY),
            vmem_limit_bytes=vmem_limit,
        ),
    )(pred, gt)

    total = jnp.sum(partials[:, 0, 0])
    denom = N * 2 * C * (H - 2) * (W - 2)          # elements of cat((G_x, G_y), dim=1)
    return (total / denom).astype(jnp.float32)     # scalar loss stays f32, as in PyTorch


def _ref_loss(pred, gt):
    """Pure-JAX reference with identical semantics (for sanity checking)."""
    def grads(img):
        x = img[:, 0]  # (N, H, W)
        gx = ((x[:, 0:-2, 0:-2] + 2.0 * x[:, 1:-1, 0:-2] + x[:, 2:, 0:-2])
              - (x[:, 0:-2, 2:] + 2.0 * x[:, 1:-1, 2:] + x[:, 2:, 2:]))
        gy = ((x[:, 0:-2, 0:-2] + 2.0 * x[:, 0:-2, 1:-1] + x[:, 0:-2, 2:])
              - (x[:, 2:, 0:-2] + 2.0 * x[:, 2:, 1:-1] + x[:, 2:, 2:]))
        return gx, gy

    pgx, pgy = grads(pred.astype(jnp.float32))
    ggx, ggy = grads(gt.astype(jnp.float32))
    diffs = jnp.concatenate([jnp.abs(pgx - ggx), jnp.abs(pgy - ggy)], axis=0)
    return jnp.mean(diffs)


if __name__ == "__main__":
    N, C, H, W = 2, 1, 16, 16
    key = jax.random.PRNGKey(0)
    k1, k2 = jax.random.split(key)
    pred = jax.random.normal(k1, (N, C, H, W), dtype=jnp.float32)
    gt = jax.random.normal(k2, (N, C, H, W), dtype=jnp.float32)

    loss = grad_loss(pred, gt)
    jax.block_until_ready(loss)

    ref = _ref_loss(pred, gt)
    assert jnp.allclose(loss, ref, rtol=1e-5, atol=1e-5), (loss, ref)

    print("KERNEL_OK")
</pallas_src>

<mosaic_0001>
module attributes {stable_mosaic.version = 11 : i64} {
  func.func @_gradloss_kernel(%arg0: i32, %arg1: i32, %arg2: memref<2x1x16x16xf32, #tpu.memory_space<vmem>>, %arg3: memref<2x1x16x16xf32, #tpu.memory_space<vmem>>, %arg4: memref<1x8x128xf32, #tpu.memory_space<vmem>>, %arg5: memref<1x14xf32, #tpu.memory_space<vmem>>) attributes {dimension_semantics = [#tpu.dimension_semantics<arbitrary>, #tpu.dimension_semantics<arbitrary>], iteration_bounds = array<i64: 1, 1>, scalar_prefetch = 0 : i64, scratch_operands = 1 : i64, tpu.core_type = #tpu.core_type<tc>, window_params = [{transform_indices = @transform_0, window_bounds = array<i64: 2, 1, 16, 16>}, {transform_indices = @transform_1, window_bounds = array<i64: 2, 1, 16, 16>}, {transform_indices = @transform_2, window_bounds = array<i64: 1, 8, 128>}]} {
    %c0_i32 = arith.constant 0 : i32
    %0 = arith.cmpi eq, %arg1, %c0_i32 : i32
    %1 = arith.extui %0 : i1 to i32
    %c0_i32_0 = arith.constant 0 : i32
    %2 = arith.cmpi ne, %1, %c0_i32_0 : i32
    scf.if %2 {
      %cst_8 = arith.constant 0.000000e+00 : f32
      %12 = vector.broadcast %cst_8 : f32 to vector<1x14xf32>
      %c0_9 = arith.constant 0 : index
      %c0_10 = arith.constant 0 : index
      %13 = vector.load %arg5[%c0_9, %c0_10] : memref<1x14xf32, #tpu.memory_space<vmem>>, vector<1x14xf32>
      tpu.vector_store %arg5[%c0_9, %c0_10], %12 {strides = array<i32>} : memref<1x14xf32, #tpu.memory_space<vmem>>, vector<1x14xf32>,
    } else {
    }
    %cst = arith.constant 0.000000e+00 : f32
    %3 = vector.broadcast %cst : f32 to vector<1x14xf32>
    %c0_i32_1 = arith.constant 0 : i32
    %c2_i32 = arith.constant 2 : i32
    %4 = arith.addi %c0_i32_1, %c2_i32 : i32
    %c1_i32 = arith.constant 1 : i32
    %5 = scf.for %arg6 = %c0_i32_1 to %4 step %c1_i32 iter_args(%arg7 = %3) -> (vector<1x14xf32>)  : i32 {
      %12 = arith.index_cast %arg6 : i32 to index
      %c0_8 = arith.constant 0 : index
      %c0_9 = arith.constant 0 : index
      %c0_10 = arith.constant 0 : index
      %13 = vector.load %arg2[%12, %c0_8, %c0_9, %c0_10] : memref<2x1x16x16xf32, #tpu.memory_space<vmem>>, vector<1x1x16x16xf32>
      %14 = vector.shape_cast %13 : vector<1x1x16x16xf32> to vector<16x16xf32>
      %15 = arith.index_cast %arg6 : i32 to index
      %c0_11 = arith.constant 0 : index
      %c0_12 = arith.constant 0 : index
      %c0_13 = arith.constant 0 : index
      %16 = vector.load %arg3[%15, %c0_11, %c0_12, %c0_13] : memref<2x1x16x16xf32, #tpu.memory_space<vmem>>, vector<1x1x16x16xf32>
      %17 = vector.shape_cast %16 : vector<1x1x16x16xf32> to vector<16x16xf32>
      %18 = arith.subf %14, %17 : vector<16x16xf32>
      %19 = vector.extract_strided_slice %18 {offsets = [0, 0], sizes = [14, 16], strides = [1, 1]} : vector<16x16xf32> to vector<14x16xf32>
      %20 = vector.extract_strided_slice %18 {offsets = [1, 0], sizes = [14, 16], strides = [1, 1]} : vector<16x16xf32> to vector<14x16xf32>
      %cst_14 = arith.constant 2.000000e+00 : f32
      %21 = vector.broadcast %cst_14 : f32 to vector<14x16xf32>
      %22 = arith.mulf %21, %20 : vector<14x16xf32>
      %23 = arith.addf %19, %22 : vector<14x16xf32>
      %24 = vector.extract_strided_slice %18 {offsets = [2, 0], sizes = [14, 16], strides = [1, 1]} : vector<16x16xf32> to vector<14x16xf32>
      %25 = arith.addf %23, %24 : vector<14x16xf32>
      %26 = vector.extract_strided_slice %25 {offsets = [0, 0], sizes = [14, 14], strides = [1, 1]} : vector<14x16xf32> to vector<14x14xf32>
      %27 = vector.extract_strided_slice %25 {offsets = [0, 2], sizes = [14, 14], strides = [1, 1]} : vector<14x16xf32> to vector<14x14xf32>
      %28 = arith.subf %26, %27 : vector<14x14xf32>
      %29 = vector.extract_strided_slice %18 {offsets = [0, 0], sizes = [16, 14], strides = [1, 1]} : vector<16x16xf32> to vector<16x14xf32>
      %30 = vector.extract_strided_slice %18 {offsets = [0, 1], sizes = [16, 14], strides = [1, 1]} : vector<16x16xf32> to vector<16x14xf32>
      %cst_15 = arith.constant 2.000000e+00 : f32
      %31 = vector.broadcast %cst_15 : f32 to vector<16x14xf32>
      %32 = arith.mulf %31, %30 : vector<16x14xf32>
      %33 = arith.addf %29, %32 : vector<16x14xf32>
      %34 = vector.extract_strided_slice %18 {offsets = [0, 2], sizes = [16, 14], strides = [1, 1]} : vector<16x16xf32> to vector<16x14xf32>
      %35 = arith.addf %33, %34 : vector<16x14xf32>
      %36 = vector.extract_strided_slice %35 {offsets = [0, 0], sizes = [14, 14], strides = [1, 1]} : vector<16x14xf32> to vector<14x14xf32>
      %37 = vector.extract_strided_slice %35 {offsets = [2, 0], sizes = [14, 14], strides = [1, 1]} : vector<16x14xf32> to vector<14x14xf32>
      %38 = arith.subf %36, %37 : vector<14x14xf32>
      %39 = math.absf %28 : vector<14x14xf32>
      %40 = math.absf %38 : vector<14x14xf32>
      %41 = arith.addf %39, %40 : vector<14x14xf32>
      %cst_16 = arith.constant dense<0.000000e+00> : vector<14xf32>
      %42 = vector.multi_reduction <add>, %41, %cst_16 [0] : vector<14x14xf32> to vector<14xf32>
      %43 = vector.shape_cast %42 : vector<14xf32> to vector<1x14xf32>
      %44 = arith.addf %arg7, %43 : vector<1x14xf32>
      scf.yield %44 : vector<1x14xf32>
    }
    %c2_i32_2 = arith.constant 2 : i32
    %c0 = arith.constant 0 : index
    %c0_3 = arith.constant 0 : index
    %6 = vector.load %arg5[%c0, %c0_3] : memref<1x14xf32, #tpu.memory_space<vmem>>, vector<1x14xf32>
    %7 = arith.addf %6, %5 : vector<1x14xf32>
    %c0_4 = arith.constant 0 : index
    %c0_5 = arith.constant 0 : index
    %8 = vector.load %arg5[%c0_4, %c0_5] : memref<1x14xf32, #tpu.memory_space<vmem>>, vector<1x14xf32>
    tpu.vector_store %arg5[%c0_4, %c0_5], %7 {strides = array<i32>} : memref<1x14xf32, #tpu.memory_space<vmem>>, vector<1x14xf32>,
    %c0_i32_6 = arith.constant 0 : i32
    %9 = arith.cmpi eq, %arg1, %c0_i32_6 : i32
    %10 = arith.extui %9 : i1 to i32
    %c0_i32_7 = arith.constant 0 : i32
    %11 = arith.cmpi ne, %10, %c0_i32_7 : i32
    scf.if %11 {
      %c0_8 = arith.constant 0 : index
      %c0_9 = arith.constant 0 : index
      %12 = vector.load %arg5[%c0_8, %c0_9] : memref<1x14xf32, #tpu.memory_space<vmem>>, vector<1x14xf32>
      %13 = vector.shape_cast %12 : vector<1x14xf32> to vector<1x1x14xf32>
      %cst_10 = arith.constant dense<0.000000e+00> : vector<1xf32>
      %14 = vector.multi_reduction <add>, %13, %cst_10 [1, 2] : vector<1x1x14xf32> to vector<1xf32>
      %15 = vector.shape_cast %14 : vector<1xf32> to vector<1x1x1xf32>
      %16 = vector.extract %15[0, 0, 0] : f32 from vector<1x1x1xf32>
      %17 = vector.broadcast %16 : f32 to vector<1x1xf32>
      %18 = vector.shape_cast %17 : vector<1x1xf32> to vector<1x1x1xf32>
      %19 = vector.broadcast %18 : vector<1x1x1xf32> to vector<1x8x128xf32>
      %c0_11 = arith.constant 0 : index
      %c0_12 = arith.constant 0 : index
      %c0_13 = arith.constant 0 : index
      %20 = vector.load %arg4[%c0_11, %c0_12, %c0_13] : memref<1x8x128xf32, #tpu.memory_space<vmem>>, vector<1x8x128xf32>
      tpu.vector_store %arg4[%c0_11, %c0_12, %c0_13], %19 {strides = array<i32>} : memref<1x8x128xf32, #tpu.memory_space<vmem>>, vector<1x8x128xf32>,
    } else {
    }
    return
  }
  func.func @transform_0(%arg0: i32, %arg1: i32) -> (i32, i32, i32, i32) {
    %c1_i32 = arith.constant 1 : i32
    %0 = arith.muli %arg0, %c1_i32 : i32
    %1 = arith.addi %0, %arg1 : i32
    %c0_i32 = arith.constant 0 : i32
    %c0_i32_0 = arith.constant 0 : i32
    %c0_i32_1 = arith.constant 0 : i32
    %c0_i32_2 = arith.constant 0 : i32
    return %1, %c0_i32, %c0_i32_0, %c0_i32_1 : i32, i32, i32, i32
  }
  func.func @transform_1(%arg0: i32, %arg1: i32) -> (i32, i32, i32, i32) {
    %c1_i32 = arith.constant 1 : i32
    %0 = arith.muli %arg0, %c1_i32 : i32
    %1 = arith.addi %0, %arg1 : i32
    %c0_i32 = arith.constant 0 : i32
    %c0_i32_0 = arith.constant 0 : i32
    %c0_i32_1 = arith.constant 0 : i32
    %c0_i32_2 = arith.constant 0 : i32
    return %1, %c0_i32, %c0_i32_0, %c0_i32_1 : i32, i32, i32, i32
  }
  func.func @transform_2(%arg0: i32, %arg1: i32) -> (i32, i32, i32) {
    %c0_i32 = arith.constant 0 : i32
    %c0_i32_0 = arith.constant 0 : i32
    %c0_i32_1 = arith.constant 0 : i32
    return %arg0, %c0_i32, %c0_i32_0 : i32, i32, i32
  }
}

</mosaic_0001>

<bundles_post_ra>
// kernel: tpu_custom_call.1
= control target key start
LH: loop header
LB: loop body
LE: loop exit
PB: predicated region body
PF: predicated region fallthrough
CT: control target
= control target key end

     0   :  { %7 = vsyncpa [#allocation4], 0  ;;  %s380_s0 = inlined_call_operand.hbm [shape: f32[2,1,16,16], index: 0, kind: input, shape index: {}]   ;;  %s381_s1 = inlined_call_operand.hbm [shape: f32[2,1,16,16], index: 1, kind: input, shape index: {}]   ;;  %s382_s2 = inlined_call_operand.hbm [shape: f32[1,8,128], index: 2, kind: output, shape index: {}]  }
   0x1   :  { %8 = vsyncpa [#allocation7], 0 }
   0x2   :  { %9 = vsyncpa [#allocation5], 0  ;;  %s19_s11 = sshll.u32 %s380_s0, 4  ;;  %s326_s12 = smov [#allocation3]   ;;  %s20_s11 = int_to_ptr.hbm [resolvable:$true] %s19_s11 }
   0x3   :  { %s21_s13 = sshll.u32 %s326_s12, 4  ;;  %s37_s16 = sshll.u32 %s381_s1, 4  ;;  %s22_s13 = int_to_ptr.vmem [resolvable:$true] %s21_s13  ;;  %s38_s16 = int_to_ptr.hbm [resolvable:$true] %s37_s16 }
   0x4   :  { %s327_s17 = smov 128   ;;  %s328_s18 = smov 8  }
   0x5   :  { %27 = dma.hbm_to_vmem [thread:$0]  %s20_s11, 512, %s22_s13, [#allocation4], %s327_s17, %s327_s17, %s328_s18  }
   0x6   :  { %s329_s19 = smov [#allocation6]  }
   0x7   :  { %s39_s20 = sshll.u32 %s329_s19, 4  ;;  %s40_s20 = int_to_ptr.vmem [resolvable:$true] %s39_s20 }
   0x8   :  { %45 = dma.hbm_to_vmem [thread:$0]  %s38_s16, 512, %s40_s20, [#allocation7], %s327_s17, %s327_s17, %s328_s18  }
   0x9   :  { %312 = dma.done.wait [#allocation4], 512  }
   0xa   :  { %313 = vsyncadd [#allocation4], 4294966784 }
   0xb   :  { %314 = dma.done.wait [#allocation7], 512  }
   0xc   :  { %315 = vsyncadd [#allocation7], 4294966784  ;;  %vm62_vm0 = vcmask 106496   ;;  %v330_v0 = vmov 0.0   ;;  %v356_v1 = vmov 0.0   ;;  %s358_s0 = smov 0  }
   0xd   :  { %63 = vst.msk [vmem:[#allocation2] sm:$0x1] %vm62_vm0, %v330_v0 }
   0xe LB: > { %s205_s1 = sshll.u32 %s324_s0, 4  ;;  %s331_s23 = smov 126   ;;  %vm84_vm1 = vcmask 1046528   ;;  %vm94_vm2 = vcmask 1045504   ;;  %vm145_vm3 = vcmask 111616   ;;  %vm143_vm4 = vcmask 113664   ;;  %s324_s0 = sphi %s358_s0, %s69_s0   ;;  %v320_v1 = vphi %v356_v1, %v383_v1  }
   0xf   : > { %s72_s21 = scalar_lea.vmem [#allocation3], %s205_s1  ;;  %s75_s22 = scalar_lea.vmem [#allocation6], %s205_s1 }
  0x10   : > { %v73_v2 = vld [vmem:[%s72_s21] sm:$0xff]  ;;  %v74_v3 = vld [vmem:[%s72_s21 + $0x8] sm:$0xff]  ;;  %s332_s24 = smov 127   ;;  %s69_s0 = sadd.s32 1, %s324_s0  }
  0x11   : > { %v76_v4 = vld [vmem:[%s75_s22] sm:$0xff]  ;;  %v77_v5 = vld [vmem:[%s75_s22 + $0x8] sm:$0xff]  ;;  %p66_p0 = scmp.ge.s32.totalorder %s69_s0, 2  }
  0x12   : > { %v78_v6 = vsub.f32 %v73_v2, %v76_v4  ;;  %v79_v7 = vsub.f32 %v74_v3, %v77_v5  ;;  %s333_s25 = smov (%p66_p0), [#allocation8]   ;;  %s182_s29 = sshll.u32 (%p66_p0), %s382_s2, 4  ;;  %s183_s29 = int_to_ptr.hbm [resolvable:$true] %s182_s29 }
  0x13   :  { %s180_s26 = sshll.u32 (%p66_p0), %s333_s25, 4  ;;  %s181_s26 = int_to_ptr.vmem [resolvable:$true] %s180_s26 }
  0x14   : > { %v80_v8 = vmul.f32 2.0, %v78_v6  ;;  %120 = vrot.lane.b32.xlu1 %v78_v6, %s331_s23  ;;  %v81_v9 = vmul.f32 2.0, %v79_v7  ;;  %v95_v10 = vrot.slane %v78_v6, 2  ;;  %v96_v11 = vrot.slane %v79_v7, 2  ;;  %v155_v53 = vld [vmem:[#allocation2] sm:$0x1] (%p66_p0) }
  0x16   : > { %112 = vrot.lane.b32.xlu0 %v80_v8, %s332_s24  ;;  %v85_v12 = vrot.slane %v80_v8, 1  ;;  %v86_v13 = vrot.slane %v81_v9, 1  ;;  %v97_v15 = vsel %vm94_vm2, %v95_v10, %v96_v11 }
  0x18   : > { %v87_v14 = vsel %vm84_vm1, %v85_v12, %v86_v13  ;;  %v91_v18 = vadd.f32 %v86_v13, %v79_v7 }
  0x19   : > { %v90_v16 = vadd.f32 %v87_v14, %v78_v6 }
  0x1a   : > { %v101_v19 = vadd.f32 %v96_v11, %v91_v18 }
  0x1b   : > { %v100_v17 = vadd.f32 %v97_v15, %v90_v16 }
  0x1c   : > { %122 = vrot.lane.b32.xlu1 %v79_v7, %s331_s23 }
  0x1d   : > { %104 = vrot.lane.b32.xlu2 %v100_v17, %s331_s23 }
  0x1e   : > { %114 = vrot.lane.b32.xlu0 %v81_v9, %s332_s24 }
  0x25   : > { %106 = vrot.lane.b32.xlu2 %v101_v19, %s331_s23 }
  0x77   : > { %v105_v20 = vpop.permute.xlu2 %104 }
  0x78   : > { %v110_v33 = vsub.f32 %v100_v17, %v105_v20 }
  0x7a   : > { %v137_v39 = vand.u32 2147483647, %v110_v33 }
  0x7f   : > { %v107_v24 = vpop.permute.xlu2 %106 }
  0x80   : > { %v111_v30 = vsub.f32 %v101_v19, %v107_v24 }
  0x82   : > { %v138_v36 = vand.u32 2147483647, %v111_v30 }
  0x86   : > { %v121_v21 = vpop.permute.xlu1 %120 }
  0x88   : > { %v113_v22 = vpop.permute.xlu0 %112 }
  0x89   : > { %v118_v23 = vadd.f32 %v113_v22, %v78_v6 }
  0x8b   : > { %v126_v27 = vadd.f32 %v121_v21, %v118_v23 }
  0x8d   : > { %v130_v31 = vrot.slane %v126_v27, 2 }
  0x8e   : > { %v123_v26 = vpop.permute.xlu1 %122 }
  0x90   : > { %v115_v25 = vpop.permute.xlu0 %114 }
  0x91   : > { %v119_v28 = vadd.f32 %v115_v25, %v79_v7 }
  0x93   : > { %v127_v29 = vadd.f32 %v123_v26, %v119_v28 }
  0x95   : > { %v131_v32 = vrot.slane %v127_v29, 2 }
  0x97   : > { %v132_v34 = vsel %vm94_vm2, %v130_v31, %v131_v32  ;;  %v136_v35 = vsub.f32 %v127_v29, %v131_v32 }
  0x98   : > { %v135_v37 = vsub.f32 %v126_v27, %v132_v34 }
  0x99   : > { %v140_v38 = vand.u32 2147483647, %v136_v35 }
  0x9a   : > { %v139_v40 = vand.u32 2147483647, %v135_v37 }
  0x9b   : > { %v142_v41 = vadd.f32 %v140_v38, %v138_v36 }
  0x9c   : > { %v141_v42 = vadd.f32 %v139_v40, %v137_v39 }
  0x9d   : > { %v146_v43 = vsel %vm145_vm3, %v142_v41, 0.0 }
  0x9e   : > { %v144_v44 = vsel %vm143_vm4, %v141_v42, 0.0 }
  0x9f   : > { %v147_v45 = vadd.f32 %v146_v43, %v144_v44 }
  0xa1   : > { %v148_v46 = vrot.slane %v147_v45, 4 }
  0xa3   : > { %v149_v47 = vadd.f32 %v148_v46, %v147_v45 }
  0xa5   : > { %v150_v48 = vrot.slane %v149_v47, 2 }
  0xa7   : > { %v151_v49 = vadd.f32 %v150_v48, %v149_v47 }
  0xa9   : > { %v152_v50 = vrot.slane %v151_v49, 1 }
  0xab   : > { %v153_v51 = vadd.f32 %v152_v50, %v151_v49  ;;  %68 = sbr.rel (!%p66_p0) target bundleno = 14 (0xe), region = 55 }
  0xad   : > { %v154_v52 = vadd.f32 %v320_v1, %v153_v51  }
  0xaf   : > { %v383_v1 = vmov %v154_v52  ;;  %v156_v54 = vadd.f32 (%p66_p0), %v155_v53, %v154_v52 }
  0xb1   :  { %158 = vst.msk [vmem:[#allocation2] sm:$0x1] %vm62_vm0, %v156_v54 }
  0xb8   :  { %v162_v55 = vld [vmem:[#allocation2] sm:$0x1] }
  0xb9   :  { %v163_v56 = vsel %vm62_vm0, %v162_v55, 0.0 }
  0xba   :  { %164 = vadd.xlane.f32.xlu0 %v163_v56 }
 0x12d   :  { %v165_v57 = vpop.xlane.xlu0 %164 }
 0x12e   :  { %v166_v58 = vrot.slane %v165_v57, 4 }
 0x130   :  { %v167_v59 = vadd.f32 %v166_v58, %v165_v57 }
 0x132   :  { %v168_v60 = vrot.slane %v167_v59, 2 }
 0x134   :  { %v169_v61 = vadd.f32 %v168_v60, %v167_v59 }
 0x136   :  { %v170_v62 = vrot.slane %v169_v61, 1 }
 0x138   :  { %v171_v63 = vadd.f32 %v170_v62, %v169_v61 }
 0x13a   :  { %206 = vpush %v171_v63 }
 0x16b   :  { %s207_s30 = spop %206 }
 0x16c   :  { %v173_v0 = vstv %s207_s30 }
 0x16d   :  { %174 = vst [vmem:[#allocation8] sm:$0xff] %v173_v0 }
 0x16e   :  { %185 = dma.vmem_to_hbm [thread:$0]  %s181_s26, 128, %s183_s29, [#allocation5]  }
 0x16f   :  { %316 = dma.done.wait [#allocation5], 128  }
 0x170   :  { %317 = vsyncadd [#allocation5], 4294967168 }
 0x171   :  { %190 = vsyncpa [#allocation4], 1 }
 0x172   :  { %191 = vsyncpa [#allocation7], 1 }
 0x173   :  { %192 = vsyncpa [#allocation5], 1 }

</bundles_post_ra>
